<compile_context>
chip_gen: v7x
topology: tpu7x:2x2x1
jax: 0.10.0
libtpu: 0.0.40
codegen_flags: <defaults>
</compile_context>

<pallas_src>
import jax
import jax.numpy as jnp
from jax import lax
from jax.experimental import pallas as pl
from jax.experimental.pallas import tpu as pltpu

# ---- module-consistent sizes -------------------------------------------------
B, L = 2, 8                 # batch, sequence length
N = B * L                   # rows after folding batch into the matmul LHS
HIDDEN = 32                 # args.hidden_size
ATTR_HIDDEN = 16            # args.attribute_hidden_size
ITEM_SIZE = 50              # args.item_size
CTX = 4                     # input_context feature dim
ATTR = 12                   # per-item attribute dim (args.items_feature.shape[1])
FEATURE = CTX + ATTR        # args.feature_size
EPS = 1e-12
INIT_RANGE = 0.02           # args.initializer_range

OUT_W = 2 * HIDDEN          # lane-dense output width: [mean | cov]
K_ITEMS = 64                # ITEM_SIZE padded up for the one-hot contraction dim
W_E_OFF = 8                 # row offset of the item-table block in the weight slab
W_ROWS = W_E_OFF + K_ITEMS  # 72 rows total in the weight slab
ROW_BLOCK = N               # one row-block covers the whole toy problem (grid=(1,))
# TODO(synk): at production scale, shrink ROW_BLOCK (multiple of 8) so blocks fit
# v7x's 64 MiB VMEM and the "parallel" grid axis shards rows across its 2 TCs.


def dlfsrec_kernel(ids_ref, ctx_ref, w_ref, p_ref, out_ref):
    # w_ref rows: [0:CTX]  = folded context weights  (CTX, 2H)
    #             [8:8+64] = folded item tables       (K_ITEMS, 2H)
    # p_ref rows: 0 = fused bias, 1 = LN gamma [mean|cov], 2 = LN beta [mean|cov]
    rows = ids_ref.shape[0]
    ids = ids_ref[...]                                            # (rows, 1) int32

    # ---- in-kernel gather as one-hot matmul + context dot (no concats) -------
    lane_k = lax.broadcasted_iota(jnp.int32, (rows, K_ITEMS), 1)
    onehot = (lane_k == ids).astype(jnp.float32)                  # ids < ITEM_SIZE <= K_ITEMS
    x = jnp.dot(onehot, w_ref[W_E_OFF:W_E_OFF + K_ITEMS, :],
                preferred_element_type=jnp.float32)
    x = x + jnp.dot(ctx_ref[...], w_ref[0:CTX, :],
                    preferred_element_type=jnp.float32)
    x = x + p_ref[0:1, :]                                         # fused biases

    # ---- mask padded positions BEFORE LayerNorm (matches the torch model) ----
    mask = (ids > 0).astype(jnp.float32)                          # (rows, 1)
    x = x * mask

    # ---- two LayerNorms over the 32-lane halves, one lane-masked pass --------
    lane_h = lax.broadcasted_iota(jnp.int32, (rows, OUT_W), 1)
    is_mean_half = lane_h < HIDDEN
    inv_h = 1.0 / HIDDEN

    sum_all = jnp.sum(x, axis=-1, keepdims=True)
    sum_m = jnp.sum(jnp.where(is_mean_half, x, 0.0), axis=-1, keepdims=True)
    mu = jnp.where(is_mean_half, sum_m, sum_all - sum_m) * inv_h  # per-lane mean

    d = x - mu
    d2 = d * d
    s2_all = jnp.sum(d2, axis=-1, keepdims=True)
    s2_m = jnp.sum(jnp.where(is_mean_half, d2, 0.0), axis=-1, keepdims=True)
    var = jnp.where(is_mean_half, s2_m, s2_all - s2_m) * inv_h

    y = d * lax.rsqrt(var + EPS)                                  # EUP rsqrt
    y = y * p_ref[1:2, :] + p_ref[2:3, :]                         # gamma/beta (packed)

    # cov half only: ELU(alpha=1) + 1; dropout is identity in eval mode
    out_ref[...] = jnp.where(is_mean_half, y,
                             jnp.where(y > 0, y + 1.0, jnp.exp(y)))


def init_params(key):
    ks = jax.random.split(key, 16)
    std = INIT_RANGE
    n = lambda k, shape: std * jax.random.normal(k, shape, jnp.float32)

    item_mean = n(ks[0], (ITEM_SIZE, HIDDEN)).at[0].set(0.0)      # padding_idx=0
    item_cov = n(ks[1], (ITEM_SIZE, HIDDEN)).at[0].set(0.0)
    items_feature = n(ks[2], (ITEM_SIZE, ATTR))                   # args.items_feature

    return dict(
        item_mean_emb=item_mean,
        item_cov_emb=item_cov,
        items_feature=items_feature,
        # side_{mean,cov}_dense, stored transposed (in, out); bias zero-init
        w_sm=n(ks[3], (FEATURE, ATTR_HIDDEN)), b_sm=jnp.zeros((1, ATTR_HIDDEN), jnp.float32),
        w_sc=n(ks[4], (FEATURE, ATTR_HIDDEN)), b_sc=jnp.zeros((1, ATTR_HIDDEN), jnp.float32),
        # fusion layers Linear(HIDDEN+ATTR_HIDDEN -> HIDDEN), split by concat order (id, side)
        wfm_id=n(ks[5], (HIDDEN, HIDDEN)), wfm_side=n(ks[6], (ATTR_HIDDEN, HIDDEN)),
        bfm=jnp.zeros((1, HIDDEN), jnp.float32),
        wfc_id=n(ks[7], (HIDDEN, HIDDEN)), wfc_side=n(ks[8], (ATTR_HIDDEN, HIDDEN)),
        bfc=jnp.zeros((1, HIDDEN), jnp.float32),
        # LayerNorms: weight=1, bias=0 (per init_weights)
        lnm_w=jnp.ones((1, HIDDEN), jnp.float32), lnm_b=jnp.zeros((1, HIDDEN), jnp.float32),
        lnc_w=jnp.ones((1, HIDDEN), jnp.float32), lnc_b=jnp.zeros((1, HIDDEN), jnp.float32),
    )


def pack_params(p):
    """One-time algebraic fold of side-dense + fusion layers + embedding tables."""
    w_sm_ctx, w_sm_attr = p['w_sm'][:CTX], p['w_sm'][CTX:]
    w_sc_ctx, w_sc_attr = p['w_sc'][:CTX], p['w_sc'][CTX:]

    # effective per-item tables (ITEM_SIZE, HIDDEN)
    e_mean = p['item_mean_emb'] @ p['wfm_id'] + p['items_feature'] @ (w_sm_attr @ p['wfm_side'])
    e_cov = p['item_cov_emb'] @ p['wfc_id'] + p['items_feature'] @ (w_sc_attr @ p['wfc_side'])
    # effective context weights (CTX, HIDDEN)
    wctx_mean = w_sm_ctx @ p['wfm_side']
    wctx_cov = w_sc_ctx @ p['wfc_side']
    # effective biases (1, HIDDEN)
    bias_mean = p['b_sm'] @ p['wfm_side'] + p['bfm']
    bias_cov = p['b_sc'] @ p['wfc_side'] + p['bfc']

    ctx_block = jnp.concatenate([wctx_mean, wctx_cov], axis=1)          # (CTX, 2H)
    ctx_block = jnp.pad(ctx_block, ((0, W_E_OFF - CTX), (0, 0)))        # (8, 2H)
    e_block = jnp.concatenate([e_mean, e_cov], axis=1)                  # (ITEM_SIZE, 2H)
    e_block = jnp.pad(e_block, ((0, K_ITEMS - ITEM_SIZE), (0, 0)))      # (K_ITEMS, 2H)
    w_slab = jnp.concatenate([ctx_block, e_block], axis=0)              # (72, 64)

    p_slab = jnp.concatenate([
        jnp.concatenate([bias_mean, bias_cov], axis=1),                 # (1, 2H)
        jnp.concatenate([p['lnm_w'], p['lnc_w']], axis=1),
        jnp.concatenate([p['lnm_b'], p['lnc_b']], axis=1),
        jnp.zeros((5, OUT_W), jnp.float32),                             # pad to 8 rows
    ], axis=0)                                                          # (8, 64)
    return w_slab, p_slab


def dlfsrec_forward(params, input_ids, input_context):
    w_slab, p_slab = pack_params(params)

    ids2d = input_ids.reshape(N, 1).astype(jnp.int32)          # pure layout plumbing
    ctx2d = input_context.reshape(N, CTX).astype(jnp.float32)

    cost = pl.CostEstimate(
        flops=2 * N * (K_ITEMS + CTX) * OUT_W + 40 * N * OUT_W,
        transcendentals=2 * N * OUT_W,
        bytes_accessed=4 * (N * 1 + N * CTX + W_ROWS * OUT_W + 8 * OUT_W + N * OUT_W),
    )

    out = pl.pallas_call(
        dlfsrec_kernel,
        out_shape=jax.ShapeDtypeStruct((N, OUT_W), jnp.float32),
        grid=(pl.cdiv(N, ROW_BLOCK),),
        in_specs=[
            pl.BlockSpec((ROW_BLOCK, 1), lambda i: (i, 0),
                         memory_space=pltpu.MemorySpace.VMEM),
            pl.BlockSpec((ROW_BLOCK, CTX), lambda i: (i, 0),
                         memory_space=pltpu.MemorySpace.VMEM),
            pl.BlockSpec((W_ROWS, OUT_W), lambda i: (0, 0),
                         memory_space=pltpu.MemorySpace.VMEM),
            pl.BlockSpec((8, OUT_W), lambda i: (0, 0),
                         memory_space=pltpu.MemorySpace.VMEM),
        ],
        out_specs=pl.BlockSpec((ROW_BLOCK, OUT_W), lambda i: (i, 0),
                               memory_space=pltpu.MemorySpace.VMEM),
        compiler_params=pltpu.CompilerParams(dimension_semantics=("parallel",)),
        cost_estimate=cost,
    )(ids2d, ctx2d, w_slab, p_slab)

    sequence_mean_output = out[:, :HIDDEN].reshape(B, L, HIDDEN)
    sequence_cov_output = out[:, HIDDEN:].reshape(B, L, HIDDEN)
    # TODO(synk): Encoder/DistSAEncoder (self.item_encoder) source is not in the
    # provided models.py excerpt; treated as identity so item_encoded_layers[-1]
    # equals its inputs.
    return sequence_mean_output, sequence_cov_output


def reference_forward(p, input_ids, input_context):
    """Plain-JAX reference following the un-folded torch computation order."""
    mean_id = p['item_mean_emb'][input_ids]
    cov_id = p['item_cov_emb'][input_ids]
    attrs = p['items_feature'][input_ids]
    side = jnp.concatenate([input_context, attrs], axis=-1)
    mean_side = side @ p['w_sm'] + p['b_sm'][0]
    cov_side = side @ p['w_sc'] + p['b_sc'][0]
    wfm = jnp.concatenate([p['wfm_id'], p['wfm_side']], axis=0)
    wfc = jnp.concatenate([p['wfc_id'], p['wfc_side']], axis=0)
    mean_seq = jnp.concatenate([mean_id, mean_side], axis=-1) @ wfm + p['bfm'][0]
    cov_seq = jnp.concatenate([cov_id, cov_side], axis=-1) @ wfc + p['bfc'][0]
    mask = (input_ids > 0).astype(jnp.float32)[..., None]
    mean_seq = mean_seq * mask
    cov_seq = cov_seq * mask

    def ln(x, w, b):
        mu = x.mean(-1, keepdims=True)
        var = ((x - mu) ** 2).mean(-1, keepdims=True)
        return (x - mu) / jnp.sqrt(var + EPS) * w + b

    mean_o = ln(mean_seq, p['lnm_w'][0], p['lnm_b'][0])
    cov_o = ln(cov_seq, p['lnc_w'][0], p['lnc_b'][0])
    cov_o = jnp.where(cov_o > 0, cov_o, jnp.exp(cov_o) - 1.0) + 1.0
    return mean_o, cov_o


if __name__ == "__main__":
    key = jax.random.PRNGKey(0)
    k_param, k_ids, k_ctx = jax.random.split(key, 3)

    params = init_params(k_param)
    input_ids = jax.random.randint(k_ids, (B, L), 0, ITEM_SIZE, dtype=jnp.int32)
    input_ids = input_ids.at[0, 0].set(0)          # exercise the padding mask
    input_context = jax.random.normal(k_ctx, (B, L, CTX), jnp.float32)

    mean_out, cov_out = dlfsrec_forward(params, input_ids, input_context)
    jax.block_until_ready((mean_out, cov_out))
    assert mean_out.shape == (B, L, HIDDEN) and cov_out.shape == (B, L, HIDDEN)

    # Gross-error sanity check vs. the un-folded reference (loose tolerance:
    # the fold + MXU f32 path vs. XLA default matmul precision differ slightly).
    ref_mean, ref_cov = reference_forward(params, input_ids, input_context)
    max_diff = float(jnp.maximum(jnp.max(jnp.abs(mean_out - ref_mean)),
                                 jnp.max(jnp.abs(cov_out - ref_cov))))
    assert max_diff < 1e-1, f"kernel deviates from reference: {max_diff}"

    print("KERNEL_OK")
</pallas_src>

<mosaic_0001>
module attributes {stable_mosaic.version = 11 : i64} {
  func.func @dlfsrec_kernel(%arg0: i32, %arg1: memref<16x1xi32, #tpu.memory_space<vmem>>, %arg2: memref<16x4xf32, #tpu.memory_space<vmem>>, %arg3: memref<72x64xf32, #tpu.memory_space<vmem>>, %arg4: memref<8x64xf32, #tpu.memory_space<vmem>>, %arg5: memref<16x64xf32, #tpu.memory_space<vmem>>) attributes {dimension_semantics = [#tpu.dimension_semantics<parallel>], iteration_bounds = array<i64: 1>, scalar_prefetch = 0 : i64, scratch_operands = 0 : i64, tpu.core_type = #tpu.core_type<tc>, window_params = [{transform_indices = @transform_0, window_bounds = array<i64: 16, 1>}, {transform_indices = @transform_1, window_bounds = array<i64: 16, 4>}, {pipeline_mode = #tpu.pipeline_mode<synchronous>, transform_indices = @transform_2, window_bounds = array<i64: 72, 64>}, {pipeline_mode = #tpu.pipeline_mode<synchronous>, transform_indices = @transform_3, window_bounds = array<i64: 8, 64>}, {transform_indices = @transform_4, window_bounds = array<i64: 16, 64>}]} {
    %c0 = arith.constant 0 : index
    %c0_0 = arith.constant 0 : index
    %0 = vector.load %arg1[%c0, %c0_0] : memref<16x1xi32, #tpu.memory_space<vmem>>, vector<16x1xi32>
    %1 = tpu.iota {dimensions = array<i32: 1>} : vector<16x64xi32>
    %2 = vector.broadcast %0 : vector<16x1xi32> to vector<16x64xi32>
    %3 = arith.cmpi eq, %1, %2 : vector<16x64xi32>
    %4 = arith.extui %3 : vector<16x64xi1> to vector<16x64xi32>
    %5 = arith.sitofp %4 : vector<16x64xi32> to vector<16x64xf32>
    %c8 = arith.constant 8 : index
    %c0_1 = arith.constant 0 : index
    %6 = vector.load %arg3[%c8, %c0_1] : memref<72x64xf32, #tpu.memory_space<vmem>>, vector<64x64xf32>
    %cst = arith.constant dense<0.000000e+00> : vector<16x64xf32>
    %7 = tpu.matmul %5, %6, %cst {dimension_numbers = #tpu.dot_dimension_numbers<[1], [0], [0], [1], [0, 0, 1, 1], [], []>} : vector<16x64xf32>, vector<64x64xf32>, vector<16x64xf32> -> vector<16x64xf32>
    %c0_2 = arith.constant 0 : index
    %c0_3 = arith.constant 0 : index
    %8 = vector.load %arg2[%c0_2, %c0_3] : memref<16x4xf32, #tpu.memory_space<vmem>>, vector<16x4xf32>
    %c0_4 = arith.constant 0 : index
    %c0_5 = arith.constant 0 : index
    %9 = vector.load %arg3[%c0_4, %c0_5] : memref<72x64xf32, #tpu.memory_space<vmem>>, vector<4x64xf32>
    %cst_6 = arith.constant dense<0.000000e+00> : vector<16x64xf32>
    %10 = tpu.matmul %8, %9, %cst_6 {dimension_numbers = #tpu.dot_dimension_numbers<[1], [0], [0], [1], [0, 0, 1, 1], [], []>} : vector<16x4xf32>, vector<4x64xf32>, vector<16x64xf32> -> vector<16x64xf32>
    %11 = arith.addf %7, %10 : vector<16x64xf32>
    %c0_7 = arith.constant 0 : index
    %c0_8 = arith.constant 0 : index
    %12 = vector.load %arg4[%c0_7, %c0_8] : memref<8x64xf32, #tpu.memory_space<vmem>>, vector<1x64xf32>
    %13 = vector.broadcast %12 : vector<1x64xf32> to vector<16x64xf32>
    %14 = arith.addf %11, %13 : vector<16x64xf32>
    %c0_i32 = arith.constant 0 : i32
    %15 = vector.broadcast %c0_i32 : i32 to vector<16x1xi32>
    %16 = arith.cmpi sgt, %0, %15 : vector<16x1xi32>
    %17 = arith.extui %16 : vector<16x1xi1> to vector<16x1xi32>
    %18 = arith.sitofp %17 : vector<16x1xi32> to vector<16x1xf32>
    %19 = vector.broadcast %18 : vector<16x1xf32> to vector<16x64xf32>
    %20 = arith.mulf %14, %19 : vector<16x64xf32>
    %21 = tpu.iota {dimensions = array<i32: 1>} : vector<16x64xi32>
    %c32_i32 = arith.constant 32 : i32
    %22 = vector.broadcast %c32_i32 : i32 to vector<16x64xi32>
    %23 = arith.cmpi slt, %21, %22 : vector<16x64xi32>
    %cst_9 = arith.constant dense<0.000000e+00> : vector<16xf32>
    %24 = vector.multi_reduction <add>, %20, %cst_9 [1] : vector<16x64xf32> to vector<16xf32>
    %25 = vector.shape_cast %24 : vector<16xf32> to vector<16x1xf32>
    %cst_10 = arith.constant 0.000000e+00 : f32
    %26 = vector.broadcast %cst_10 : f32 to vector<16x64xf32>
    %27 = arith.select %23, %20, %26 : vector<16x64xi1>, vector<16x64xf32>
    %cst_11 = arith.constant dense<0.000000e+00> : vector<16xf32>
    %28 = vector.multi_reduction <add>, %27, %cst_11 [1] : vector<16x64xf32> to vector<16xf32>
    %29 = vector.shape_cast %28 : vector<16xf32> to vector<16x1xf32>
    %30 = arith.subf %25, %29 : vector<16x1xf32>
    %31 = vector.shape_cast %29 : vector<16x1xf32> to vector<16x1xf32>
    %32 = vector.broadcast %31 : vector<16x1xf32> to vector<16x64xf32>
    %33 = vector.shape_cast %30 : vector<16x1xf32> to vector<16x1xf32>
    %34 = vector.broadcast %33 : vector<16x1xf32> to vector<16x64xf32>
    %35 = arith.select %23, %32, %34 : vector<16x64xi1>, vector<16x64xf32>
    %cst_12 = arith.constant 3.125000e-02 : f32
    %36 = vector.broadcast %cst_12 : f32 to vector<16x64xf32>
    %37 = arith.mulf %35, %36 : vector<16x64xf32>
    %38 = arith.subf %20, %37 : vector<16x64xf32>
    %39 = arith.mulf %38, %38 : vector<16x64xf32>
    %cst_13 = arith.constant dense<0.000000e+00> : vector<16xf32>
    %40 = vector.multi_reduction <add>, %39, %cst_13 [1] : vector<16x64xf32> to vector<16xf32>
    %41 = vector.shape_cast %40 : vector<16xf32> to vector<16x1xf32>
    %cst_14 = arith.constant 0.000000e+00 : f32
    %42 = vector.broadcast %cst_14 : f32 to vector<16x64xf32>
    %43 = arith.select %23, %39, %42 : vector<16x64xi1>, vector<16x64xf32>
    %cst_15 = arith.constant dense<0.000000e+00> : vector<16xf32>
    %44 = vector.multi_reduction <add>, %43, %cst_15 [1] : vector<16x64xf32> to vector<16xf32>
    %45 = vector.shape_cast %44 : vector<16xf32> to vector<16x1xf32>
    %46 = arith.subf %41, %45 : vector<16x1xf32>
    %47 = vector.shape_cast %45 : vector<16x1xf32> to vector<16x1xf32>
    %48 = vector.broadcast %47 : vector<16x1xf32> to vector<16x64xf32>
    %49 = vector.shape_cast %46 : vector<16x1xf32> to vector<16x1xf32>
    %50 = vector.broadcast %49 : vector<16x1xf32> to vector<16x64xf32>
    %51 = arith.select %23, %48, %50 : vector<16x64xi1>, vector<16x64xf32>
    %cst_16 = arith.constant 3.125000e-02 : f32
    %52 = vector.broadcast %cst_16 : f32 to vector<16x64xf32>
    %53 = arith.mulf %51, %52 : vector<16x64xf32>
    %cst_17 = arith.constant 9.99999996E-13 : f32
    %54 = vector.broadcast %cst_17 : f32 to vector<16x64xf32>
    %55 = arith.addf %53, %54 : vector<16x64xf32>
    %56 = math.rsqrt %55 : vector<16x64xf32>
    %57 = arith.mulf %38, %56 : vector<16x64xf32>
    %c1 = arith.constant 1 : index
    %c0_18 = arith.constant 0 : index
    %58 = vector.load %arg4[%c1, %c0_18] : memref<8x64xf32, #tpu.memory_space<vmem>>, vector<1x64xf32>
    %59 = vector.broadcast %58 : vector<1x64xf32> to vector<16x64xf32>
    %60 = arith.mulf %57, %59 : vector<16x64xf32>
    %c2 = arith.constant 2 : index
    %c0_19 = arith.constant 0 : index
    %61 = vector.load %arg4[%c2, %c0_19] : memref<8x64xf32, #tpu.memory_space<vmem>>, vector<1x64xf32>
    %62 = vector.broadcast %61 : vector<1x64xf32> to vector<16x64xf32>
    %63 = arith.addf %60, %62 : vector<16x64xf32>
    %cst_20 = arith.constant 0.000000e+00 : f32
    %64 = vector.broadcast %cst_20 : f32 to vector<16x64xf32>
    %65 = arith.cmpf ogt, %63, %64 : vector<16x64xf32>
    %cst_21 = arith.constant 1.000000e+00 : f32
    %66 = vector.broadcast %cst_21 : f32 to vector<16x64xf32>
    %67 = arith.addf %63, %66 : vector<16x64xf32>
    %68 = math.exp %63 : vector<16x64xf32>
    %69 = arith.select %65, %67, %68 : vector<16x64xi1>, vector<16x64xf32>
    %70 = arith.select %23, %63, %69 : vector<16x64xi1>, vector<16x64xf32>
    %c0_22 = arith.constant 0 : index
    %c0_23 = arith.constant 0 : index
    %71 = vector.load %arg5[%c0_22, %c0_23] : memref<16x64xf32, #tpu.memory_space<vmem>>, vector<16x64xf32>
    tpu.vector_store %arg5[%c0_22, %c0_23], %70 {strides = array<i32>} : memref<16x64xf32, #tpu.memory_space<vmem>>, vector<16x64xf32>,
    return
  }
  func.func @transform_0(%arg0: i32) -> (i32, i32) {
    %c0_i32 = arith.constant 0 : i32
    %c0_i32_0 = arith.constant 0 : i32
    return %arg0, %c0_i32 : i32, i32
  }
  func.func @transform_1(%arg0: i32) -> (i32, i32) {
    %c0_i32 = arith.constant 0 : i32
    %c0_i32_0 = arith.constant 0 : i32
    return %arg0, %c0_i32 : i32, i32
  }
  func.func @transform_2(%arg0: i32) -> (i32, i32) {
    %c0_i32 = arith.constant 0 : i32
    %c0_i32_0 = arith.constant 0 : i32
    %c0_i32_1 = arith.constant 0 : i32
    return %c0_i32, %c0_i32_0 : i32, i32
  }
  func.func @transform_3(%arg0: i32) -> (i32, i32) {
    %c0_i32 = arith.constant 0 : i32
    %c0_i32_0 = arith.constant 0 : i32
    %c0_i32_1 = arith.constant 0 : i32
    return %c0_i32, %c0_i32_0 : i32, i32
  }
  func.func @transform_4(%arg0: i32) -> (i32, i32) {
    %c0_i32 = arith.constant 0 : i32
    %c0_i32_0 = arith.constant 0 : i32
    return %arg0, %c0_i32 : i32, i32
  }
}

</mosaic_0001>

<bundles_post_ra>
// kernel: tpu_custom_call.1
= control target key start
LH: loop header
LB: loop body
LE: loop exit
PB: predicated region body
PF: predicated region fallthrough
CT: control target
= control target key end

     0   :  { %v444_v2 = vmov 0   ;;  %s573_s0 = inlined_call_operand.vmem [shape: s32[16,1], index: 0, kind: input, shape index: {}]   ;;  %s574_s1 = inlined_call_operand.vmem [shape: f32[16,4], index: 1, kind: input, shape index: {}]   ;;  %s575_s2 = inlined_call_operand.vmem [shape: f32[72,64], index: 2, kind: input, shape index: {}]   ;;  %s576_s3 = inlined_call_operand.vmem [shape: f32[8,64], index: 3, kind: input, shape index: {}]   ;;  %s577_s4 = inlined_call_operand.hbm [shape: f32[16,64], index: 4, kind: output, shape index: {}]  }
   0x1   :  { %v18_v0 = vld [vmem:[%s573_s0] sm:$0xff]  ;;  %v34_v1 = vld [vmem:[%s575_s2 + $0x8] sm:$0xff]  ;;  %405 = vset.pattern.permute.xlu0 %v444_v2  ;;  %v35_v3 = vld [vmem:[%s575_s2 + $0x10] sm:$0xff]  ;;  %406 = vset.pattern.permute.xlu1 %v444_v2 }
   0x2   :  { %v36_v4 = vld [vmem:[%s575_s2 + $0x18] sm:$0xff]  ;;  %v37_v5 = vld [vmem:[%s575_s2 + $0x20] sm:$0xff]  ;;  %23 = vperm.xlu0 %405, %v18_v0   ;;  %v19_v6 = vld [vmem:[%s573_s0 + $0x8] sm:$0xff]  ;;  %v382_v7 = vpack.c.bf16 %v35_v3, %v34_v1 }
   0x3   :  { %v386_v8 = vpack.c.bf16 %v37_v5, %v36_v4  ;;  %v38_v9 = vld [vmem:[%s575_s2 + $0x28] sm:$0xff]  ;;  %v39_v10 = vld [vmem:[%s575_s2 + $0x30] sm:$0xff] }
   0x4   :  { %9 = vsyncpa [#allocation3], 0  ;;  %383 = vmatprep.subr.bf16.mxu0 %v382_v7  ;;  %v44_v11 = vld [vmem:[%s575_s2] sm:$0xf]  ;;  %vm52_vm0 = vcmask 1043456   ;;  %vm220_vm1 = vcmp.gt.s32.totalorder %v18_v0, 0  ;;  %v390_v13 = vpack.c.bf16 %v39_v10, %v38_v9  ;;  %v20_v22 = vlaneseq }
   0x5   :  { %vm221_vm2 = vcmp.gt.s32.totalorder %v19_v6, 0  ;;  %385 = vmatpush3.bf16.msra.mxu0 %v382_v7  ;;  %358 = vmatprep.subr.msk.mxu1 %vm52_vm0, %v44_v11  ;;  %v42_v12 = vld [vmem:[%s574_s1] sm:$0xff]  ;;  %vm45_vm3 = vcmask 31744   ;;  %v43_v14 = vld [vmem:[%s574_s1 + $0x8] sm:$0xff]  ;;  %v40_v15 = vld [vmem:[%s575_s2 + $0x38] sm:$0xff]  ;;  %v445_v17 = vmov 0.0  }
   0x6   :  { %26 = vperm.xlu0 %405, %v19_v6   ;;  %387 = vmatprep.subr.bf16.mxu0 %v386_v8  ;;  %v41_v16 = vld [vmem:[%s575_s2 + $0x40] sm:$0xff]  ;;  %v341_v18 = vsel %vm220_vm1, 1.0, %v445_v17  ;;  %v342_v19 = vsel %vm221_vm2, 1.0, %v445_v17  ;;  %v515_v23 = vand.u32 127, %v20_v22  ;;  %vm131_vm4 = vcmask 523264   ;;  %s446_s18 = smov [#allocation2]  }
   0x7   :  { %359 = vmatpush3.msk.msra.mxu1 %vm52_vm0, %v44_v11  ;;  %360 = vmatprep.mubr.msk.f32.mxu1 %vm45_vm3, %v42_v12  ;;  %v407_v20 = vpack.i.bf16 %v342_v19, %v341_v18  ;;  %v394_v21 = vpack.c.bf16 %v41_v16, %v40_v15  ;;  %v340_v32 = vld [vmem:[%s576_s3] ss:$0 sm:$0xff]  ;;  %s322_s19 = sshll.u32 %s446_s18, 4  ;;  %s323_s19 = int_to_ptr.vmem [resolvable:$true] %s322_s19 }
   0x8   :  { %361 = vmatmul.mubr.msk.f32.vlgmr.msra.gmra.mrb[0].mxu1 %vm45_vm3, %v43_v14  ;;  %vm238_vm7 = vcmp.lt.s32.totalorder %v515_v23, 32  ;;  %p425_p1 = scmp.lt.s32.totalorder %s323_s19, %s323_s19 }
   0x9   :  { %389 = vmatpush3.bf16.msra.mxu0 %v386_v8  ;;  %408 = vperm.xlu1 %406, %v407_v20  }
   0xa   :  { %391 = vmatprep.subr.bf16.mxu0 %v390_v13 }
   0xd   :  { %393 = vmatpush3.bf16.msra.mxu0 %v390_v13 }
   0xe   :  { %395 = vmatprep.subr.bf16.mxu0 %v394_v21 }
  0x11   :  { %397 = vmatpush3.bf16.msra.mxu0 %v394_v21  ;;  %v344_v21 = vld [vmem:[%s576_s3 + $0x2] ss:$0 sm:$0xff] }
  0x81   :  { %v24_v24 = vpop.permute.xlu0 %23 }
  0x82   :  { %vm28_vm5 = vcmp.eq.s32.totalorder %v515_v23, %v24_v24 }
  0x83   :  { %v333_v25 = vsel %vm28_vm5, 1.0, %v445_v17 }
  0x84   :  { %379 = vmatprep.mubr.msk.f32.mxu0 %vm131_vm4, %v333_v25 }
  0x85   :  { %v27_v26 = vpop.permute.xlu0 %26 }
  0x86   :  { %vm29_vm6 = vcmp.eq.s32.totalorder %v515_v23, %v27_v26 }
  0x87   :  { %v334_v27 = vsel %vm29_vm6, 1.0, %v445_v17  ;;  %v343_v17 = vld [vmem:[%s576_s3 + $0x1] ss:$0 sm:$0xff]  ;;  %s420_s3 = scalar_lea.vmem %s323_s19, 256 }
  0x88   :  { %380 = vmatmul.mubr.msk.f32.vlgmr.msra.gmra.mrb[0].mxu0 %vm131_vm4, %v334_v27  ;;  %v409_v30 = vpop.permute.xlu1 %408  ;;  %p421_p0 = scmp.ne.s32.totalorder %s323_s19, %s420_s3  ;;  %p426_p2 = scmp.lt.s32.totalorder %s420_s3, %s420_s3 }
  0x89   :  { %v411_v35 = vunpack.i.h.bf16 %v409_v30  ;;  %v410_v37 = vunpack.i.l.bf16 %v409_v30 }
  0x8a   :  { %p427_p3 = por %p426_p2, %p425_p1 }
  0x8c   :  { %p428_p4 = pnand %p427_p3, %p421_p0 }
  0xdb   :  { %v362_v28 = vpop.f32.mrb[0].mxu1 }
  0xdc   :  { %v122_v29 = vpop.f32.mrb[1].mxu1 }
 0x15b   :  { %v381_v31 = vpop.f32.mrb[0].mxu0 }
 0x15c   :  { %v210_v33 = vadd.f32 %v381_v31, %v362_v28  ;;  %v204_v34 = vpop.f32.mrb[1].mxu0 }
 0x15d   :  { %v205_v36 = vadd.f32 %v204_v34, %v122_v29 }
 0x15e   :  { %v219_v38 = vadd.f32 %v340_v32, %v210_v33 }
 0x15f   :  { %v218_v39 = vadd.f32 %v340_v32, %v205_v36 }
 0x160   :  { %v237_v40 = vmul.f32 %v411_v35, %v219_v38 }
 0x161   :  { %v236_v41 = vmul.f32 %v410_v37, %v218_v39 }
 0x162   :  { %v242_v42 = vsel %vm131_vm4, %v237_v40, 0.0  ;;  %v246_v45 = vsel %vm238_vm7, %v237_v40, 0.0 }
 0x163   :  { %243 = vadd.xlane.f32.xlu0 %v242_v42  ;;  %v239_v43 = vsel %vm131_vm4, %v236_v41, 0.0  ;;  %v245_v44 = vsel %vm238_vm7, %v236_v41, 0.0  ;;  %v250_v47 = vsel %vm131_vm4, %v246_v45, 0.0 }
 0x164   :  { %240 = vadd.xlane.f32.xlu1 %v239_v43  ;;  %v247_v46 = vsel %vm131_vm4, %v245_v44, 0.0 }
 0x167   :  { %248 = vadd.xlane.f32.xlu0 %v247_v46 }
 0x168   :  { %251 = vadd.xlane.f32.xlu1 %v250_v47 }
 0x1f0   :  { %v244_v48 = vpop.xlane.xlu0 %243 }
 0x1f1   :  { %v241_v49 = vpop.xlane.xlu1 %240 }
 0x1f4   :  { %v249_v50 = vpop.xlane.xlu0 %248 }
 0x1f5   :  { %v253_v51 = vsub.f32 %v241_v49, %v249_v50  ;;  %v252_v52 = vpop.xlane.xlu1 %251 }
 0x1f6   :  { %v254_v53 = vsub.f32 %v244_v48, %v252_v52 }
 0x1f7   :  { %v255_v54 = vsel %vm238_vm7, %v249_v50, %v253_v51 }
 0x1f8   :  { %v257_v55 = vmul.f32 0.03125, %v255_v54  ;;  %v256_v56 = vsel %vm238_vm7, %v252_v52, %v254_v53 }
 0x1f9   :  { %v258_v57 = vmul.f32 0.03125, %v256_v56 }
 0x1fa   :  { %v259_v58 = vsub.f32 %v236_v41, %v257_v55 }
 0x1fb   :  { %v260_v59 = vsub.f32 %v237_v40, %v258_v57 }
 0x1fc   :  { %v261_v60 = vmul.f32 %v259_v58, %v259_v58 }
 0x1fd   :  { %v262_v61 = vmul.f32 %v260_v59, %v260_v59 }
 0x1fe   :  { %v263_v62 = vsel %vm131_vm4, %v261_v60, 0.0  ;;  %v269_v0 = vsel %vm238_vm7, %v261_v60, 0.0 }
 0x1ff   :  { %264 = vadd.xlane.f32.xlu0 %v263_v62  ;;  %v266_v63 = vsel %vm131_vm4, %v262_v61, 0.0  ;;  %v270_v1 = vsel %vm238_vm7, %v262_v61, 0.0  ;;  %v271_v2 = vsel %vm131_vm4, %v269_v0, 0.0 }
 0x200   :  { %267 = vadd.xlane.f32.xlu1 %v266_v63  ;;  %v274_v3 = vsel %vm131_vm4, %v270_v1, 0.0 }
 0x203   :  { %272 = vadd.xlane.f32.xlu0 %v271_v2 }
 0x204   :  { %275 = vadd.xlane.f32.xlu1 %v274_v3 }
 0x28c   :  { %v265_v4 = vpop.xlane.xlu0 %264 }
 0x28d   :  { %v268_v5 = vpop.xlane.xlu1 %267 }
 0x290   :  { %v273_v6 = vpop.xlane.xlu0 %272 }
 0x291   :  { %v277_v7 = vsub.f32 %v265_v4, %v273_v6  ;;  %v276_v8 = vpop.xlane.xlu1 %275 }
 0x292   :  { %v278_v9 = vsub.f32 %v268_v5, %v276_v8 }
 0x293   :  { %v279_v10 = vsel %vm238_vm7, %v273_v6, %v277_v7 }
 0x294   :  { %v281_v11 = vmul.f32 0.03125, %v279_v10  ;;  %v280_v12 = vsel %vm238_vm7, %v276_v8, %v278_v9 }
 0x295   :  { %v282_v13 = vmul.f32 0.03125, %v280_v12 }
 0x296   :  { %v283_v14 = vadd.f32 1e-12, %v281_v11 }
 0x297   :  { %v284_v15 = vadd.f32 1e-12, %v282_v13 }
 0x298   :  { %412 = vrsqrt.f32 %v283_v14 }
 0x299   :  { %414 = vrsqrt.f32 %v284_v15 }
 0x2a2   :  { %v413_v16 = vpop.eup %412 }
 0x2a3   :  { %v415_v18 = vpop.eup %414  ;;  %v287_v19 = vmul.f32 %v413_v16, %v259_v58 }
 0x2a4   :  { %v288_v20 = vmul.f32 %v415_v18, %v260_v59 }
 0x2a5   :  { %v294_v22 = vmul.f32 %v343_v17, %v287_v19 }
 0x2a6   :  { %v295_v24 = vmul.f32 %v343_v17, %v288_v20 }
 0x2a7   :  { %v301_v25 = vadd.f32 %v344_v21, %v294_v22 }
 0x2a8   :  { %v302_v26 = vadd.f32 %v344_v21, %v295_v24 }
 0x2a9   :  { %v307_v27 = vmul.f32 1.442695, %v301_v25  ;;  %v305_v29 = vadd.f32 1.0, %v301_v25  ;;  %vm303_vm8 = vcmp.gt.f32.partialorder %v301_v25, 0.0 }
 0x2aa   :  { %v309_v28 = vmul.f32 1.442695, %v302_v26  ;;  %v306_v31 = vadd.f32 1.0, %v302_v26  ;;  %vm304_vm9 = vcmp.gt.f32.partialorder %v302_v26, 0.0 }
 0x2ab   :  { %416 = vpow2.f32 %v307_v27 }
 0x2ac   :  { %418 = vpow2.f32 %v309_v28 }
 0x2b5   :  { %v417_v30 = vpop.eup %416 }
 0x2b6   :  { %v419_v32 = vpop.eup %418  ;;  %v311_v33 = vsel %vm303_vm8, %v305_v29, %v417_v30 }
 0x2b7   :  { %v312_v34 = vsel %vm304_vm9, %v306_v31, %v419_v32  ;;  %v313_v35 = vsel %vm238_vm7, %v301_v25, %v311_v33 }
 0x2b8   :  { %v314_v36 = vsel %vm238_vm7, %v302_v26, %v312_v34  ;;  %315 = vst.msk [vmem:[#allocation2] sm:$0xff] %vm131_vm4, %v313_v35 }
 0x2b9   :  { %316 = vst.msk [vmem:[#allocation2 + $0x8] sm:$0xff] %vm131_vm4, %v314_v36 }
 0x2ba   :  { %431 = shalt.err (!%p428_p4)
}
 0x2bb   :  { %s432_s22 = scalar_lea.hbm %s577_s4, 256 }
 0x2bc   :  { %p433_p5 = scmp.ne.s32.totalorder %s577_s4, %s432_s22  ;;  %p436_p6 = scmp.lt.u32.totalorder %s432_s22, %s577_s4 }
 0x2be   :  { %p438_p7 = pnand %p436_p6, %p433_p5 }
 0x2c0   :  { %441 = shalt.err (!%p438_p7)
}
 0x2c1   :  { %s447_s27 = smov 128   ;;  %s448_s28 = smov 8  }
 0x2c2   :  { %328 = dma.vmem_to_hbm [thread:$0]  %s323_s19, 256, %s577_s4, [#allocation3], %s447_s27, %s447_s27, %s448_s28  }
 0x2c3   :  { %442 = dma.done.wait [#allocation3], 256  }
 0x2c4   :  { %443 = vsyncadd [#allocation3], 4294967040 }
 0x2c5   :  { %332 = vsyncpa [#allocation3], 1 }

</bundles_post_ra>
